<compile_context>
chip_gen: v5e
topology: v5e:2x2
jax: 0.10.0
libtpu: 0.0.40
codegen_flags: <defaults>
</compile_context>

<pallas_src>
import jax
import jax.numpy as jnp
from jax.experimental import pallas as pl
from jax.experimental.pallas import tpu as pltpu


def _disparity_regression_kernel(x_ref, o_ref):
    # x_ref: (1, D, TR, 128) tile of the cost volume (VMEM)
    # o_ref: (1, TR, 128) output tile
    d_max = x_ref.shape[1]
    acc = jnp.zeros(o_ref.shape, jnp.float32)
    # Unrolled scalar-weight accumulate; d == 0 contributes nothing.
    for d in range(1, d_max):
        acc = acc + x_ref[:, d, :, :].astype(jnp.float32) * jnp.float32(d)
    o_ref[...] = acc.astype(o_ref.dtype)


def disparity_regression(x, *, target_tile_bytes=2 * 1024 * 1024):
    """x: [B, D, H, W] (softmaxed cost volume, f32 or bf16). Returns f32 [B, H, W]."""
    B, D, H, W = x.shape
    HW = H * W
    itemsize = jnp.dtype(x.dtype).itemsize

    # Lane-dense layout: flatten H*W into (rows, 128).
    rows = pl.cdiv(HW, 128)

    # Rows per spatial tile: multiple of 8 (sublane-aligned), sized so one
    # double-buffered (D, TR, 128) input block stays around ~2 MiB — safely
    # inside the default scoped VMEM on v5e (16 MiB), v6e (32 MiB), v7x (32 MiB).
    tr = max(8, (target_tile_bytes // max(1, D * itemsize * 128)) // 8 * 8)
    if tr >= rows:
        tr = rows                      # single tile: block == full extent (always legal)
    rows_padded = pl.cdiv(rows, tr) * tr
    hw_padded = rows_padded * 128

    # Flatten + zero-pad the spatial tail (zeros contribute 0 to the weighted sum).
    x_flat = x.reshape(B, D, HW)
    if hw_padded != HW:
        x_flat = jnp.pad(x_flat, ((0, 0), (0, 0), (0, hw_padded - HW)))
    x_tiled = x_flat.reshape(B, D, rows_padded, 128)

    grid = (B, rows_padded // tr)

    out_tiled = pl.pallas_call(
        _disparity_regression_kernel,
        out_shape=jax.ShapeDtypeStruct((B, rows_padded, 128), jnp.float32),
        grid_spec=pltpu.PrefetchScalarGridSpec(
            num_scalar_prefetch=0,
            grid=grid,
            in_specs=[
                pl.BlockSpec((1, D, tr, 128), lambda b, s: (b, 0, s, 0)),
            ],
            out_specs=pl.BlockSpec((1, tr, 128), lambda b, s: (b, s, 0)),
        ),
        compiler_params=pltpu.CompilerParams(
            dimension_semantics=("parallel", "parallel"),
        ),
        cost_estimate=pl.CostEstimate(
            flops=2 * B * D * HW,
            transcendentals=0,
            bytes_accessed=B * D * HW * itemsize + B * HW * 4,
        ),
    )(x_tiled)

    # Undo padding / flattening.
    return out_tiled.reshape(B, rows_padded * 128)[:, :HW].reshape(B, H, W)


if __name__ == "__main__":
    key = jax.random.PRNGKey(0)
    B, D, H, W = 2, 4, 16, 16  # maxdisp = 4

    # Synthetic softmax-normalized cost volume (as in StereoNet usage).
    logits = jax.random.normal(key, (B, D, H, W), dtype=jnp.float32)
    x = jax.nn.softmax(logits, axis=1)

    out = disparity_regression(x)
    out = jax.block_until_ready(out)

    # Reference (same math as the PyTorch module).
    disp = jnp.arange(D, dtype=jnp.float32).reshape(1, D, 1, 1)
    ref = jnp.sum(x * disp, axis=1)
    assert out.shape == (B, H, W)
    assert jnp.allclose(out, ref, atol=1e-5, rtol=1e-5)

    print("KERNEL_OK")
</pallas_src>

<mosaic_0001>
module attributes {stable_mosaic.version = 11 : i64} {
  func.func @_disparity_regression_kernel(%arg0: i32, %arg1: i32, %arg2: memref<1x4x2x128xf32, #tpu.memory_space<vmem>>, %arg3: memref<1x2x128xf32, #tpu.memory_space<vmem>>) attributes {dimension_semantics = [#tpu.dimension_semantics<parallel>, #tpu.dimension_semantics<parallel>], iteration_bounds = array<i64: 2, 1>, scalar_prefetch = 0 : i64, scratch_operands = 0 : i64, tpu.core_type = #tpu.core_type<tc>, window_params = [{transform_indices = @transform_0, window_bounds = array<i64: 1, 4, 2, 128>}, {transform_indices = @transform_1, window_bounds = array<i64: 1, 2, 128>}]} {
    %cst = arith.constant 0.000000e+00 : f32
    %0 = vector.broadcast %cst : f32 to vector<1x2x128xf32>
    %c0 = arith.constant 0 : index
    %c1 = arith.constant 1 : index
    %c0_0 = arith.constant 0 : index
    %c0_1 = arith.constant 0 : index
    %1 = vector.load %arg2[%c0, %c1, %c0_0, %c0_1] : memref<1x4x2x128xf32, #tpu.memory_space<vmem>>, vector<1x1x2x128xf32>
    %2 = vector.shape_cast %1 : vector<1x1x2x128xf32> to vector<1x2x128xf32>
    %cst_2 = arith.constant 1.000000e+00 : f32
    %3 = vector.broadcast %cst_2 : f32 to vector<1x2x128xf32>
    %4 = arith.mulf %2, %3 : vector<1x2x128xf32>
    %5 = arith.addf %0, %4 : vector<1x2x128xf32>
    %c0_3 = arith.constant 0 : index
    %c2 = arith.constant 2 : index
    %c0_4 = arith.constant 0 : index
    %c0_5 = arith.constant 0 : index
    %6 = vector.load %arg2[%c0_3, %c2, %c0_4, %c0_5] : memref<1x4x2x128xf32, #tpu.memory_space<vmem>>, vector<1x1x2x128xf32>
    %7 = vector.shape_cast %6 : vector<1x1x2x128xf32> to vector<1x2x128xf32>
    %cst_6 = arith.constant 2.000000e+00 : f32
    %8 = vector.broadcast %cst_6 : f32 to vector<1x2x128xf32>
    %9 = arith.mulf %7, %8 : vector<1x2x128xf32>
    %10 = arith.addf %5, %9 : vector<1x2x128xf32>
    %c0_7 = arith.constant 0 : index
    %c3 = arith.constant 3 : index
    %c0_8 = arith.constant 0 : index
    %c0_9 = arith.constant 0 : index
    %11 = vector.load %arg2[%c0_7, %c3, %c0_8, %c0_9] : memref<1x4x2x128xf32, #tpu.memory_space<vmem>>, vector<1x1x2x128xf32>
    %12 = vector.shape_cast %11 : vector<1x1x2x128xf32> to vector<1x2x128xf32>
    %cst_10 = arith.constant 3.000000e+00 : f32
    %13 = vector.broadcast %cst_10 : f32 to vector<1x2x128xf32>
    %14 = arith.mulf %12, %13 : vector<1x2x128xf32>
    %15 = arith.addf %10, %14 : vector<1x2x128xf32>
    %c0_11 = arith.constant 0 : index
    %c0_12 = arith.constant 0 : index
    %c0_13 = arith.constant 0 : index
    %16 = vector.load %arg3[%c0_11, %c0_12, %c0_13] : memref<1x2x128xf32, #tpu.memory_space<vmem>>, vector<1x2x128xf32>
    tpu.vector_store %arg3[%c0_11, %c0_12, %c0_13], %15 {strides = array<i32>} : memref<1x2x128xf32, #tpu.memory_space<vmem>>, vector<1x2x128xf32>,
    return
  }
  func.func @transform_0(%arg0: i32, %arg1: i32) -> (i32, i32, i32, i32) {
    %c0_i32 = arith.constant 0 : i32
    %c0_i32_0 = arith.constant 0 : i32
    %c0_i32_1 = arith.constant 0 : i32
    return %arg0, %c0_i32, %arg1, %c0_i32_0 : i32, i32, i32, i32
  }
  func.func @transform_1(%arg0: i32, %arg1: i32) -> (i32, i32, i32) {
    %c0_i32 = arith.constant 0 : i32
    %c0_i32_0 = arith.constant 0 : i32
    return %arg0, %arg1, %c0_i32 : i32, i32, i32
  }
}

</mosaic_0001>

<bundles_post_ra>
// kernel: tpu_custom_call.1
= control target key start
LH: loop header
LB: loop body
LE: loop exit
PB: predicated region body
PF: predicated region fallthrough
CT: control target
= control target key end

     0   :  { %6 = vsyncpa [#allocation3], 0  ;;  %s593_s0 = inlined_call_operand.hbm [shape: f32[2,4,2,128], index: 0, kind: input, shape index: {}]   ;;  %s594_s1 = inlined_call_operand.hbm [shape: f32[2,2,128], index: 1, kind: output, shape index: {}]  }
   0x1   :  { %8 = vsyncpa [#allocation3 + $0x1], 0 }
   0x2   :  { %9 = vsyncpa [#allocation4], 0 }
   0x3   :  { %11 = vsyncpa [#allocation4 + $0x1], 0  ;;  %s472_s6 = smov 0   ;;  %s474_s7 = smov 0  }
   0x4   :  { %s476_s8 = smov 0   ;;  %s478_s9 = smov 0  }
   0x5   :  { %s480_s10 = smov 0   ;;  %s482_s11 = smov 0  }
   0x6 LB: > { %s264_s12 = sadd.s32 4294967295, %s458_s11   ;;  %s265_s13 = sadd.s32 4294967294, %s458_s11   ;;  %s458_s11 = sphi %s482_s11, %s17_s11   ;;  %s454_s10 = sphi %s480_s10, %s603_s10   ;;  %s450_s9 = sphi %s478_s9, %s602_s9   ;;  %s446_s8 = sphi %s476_s8, %s601_s8   ;;  %s442_s7 = sphi %s474_s7, %s600_s7   ;;  %s438_s6 = sphi %s472_s6, %s599_s6  }
   0x7   : > { %s29_s14 = sadd.s32 1, %s454_s10  ;;  %s38_s15 = sadd.s32 1, %s446_s8 }
   0x8   : > { %p31_p0 = scmp.ge.s32.totalorder %s29_s14, 2  ;;  %p45_p1 = scmp.ne.s32.totalorder %s446_s8, %s442_s7 }
   0x9   : > { %p46_p2 = scmp.eq.s32.totalorder %s458_s11, 0  ;;  %p51_p3 = scmp.ne.s32.totalorder %s442_s7, %s438_s6 }
   0xa   : > { %s605_s14 = smov (%p31_p0, %s29_s14), 0  ;;  %p52_p5 = scmp.eq.s32.totalorder %s264_s12, 0 }
   0xb   : > { %p513_p4 = por %p46_p2, %p45_p1  ;;  %s33_s17 = ssub.s32 %s454_s10, %s605_s14 }
   0xc   : > { %p77_p6 = scmp.eq.s32.totalorder %s264_s12, 1  ;;  %p36_p7 = scmp.eq.s32.totalorder %s33_s17, 0 }
   0xd   : > { %p519_p8 = por %p52_p5, %p51_p3  ;;  %p83_p10 = scmp.eq.s32.totalorder %s265_s13, 1 }
   0xe   : > { %p523_p9 = por %p77_p6, %p45_p1  ;;  %p267_p12 = scmp.ge.s32.totalorder %s458_s11, 2 }
   0xf   : > { %s528_s20 = scalar_select %p36_p7, %s446_s8, %s38_s15  }
  0x10   : > { %p530_p11 = por %p83_p10, %p51_p3  ;;  %p294_p13 = scmp.lt.s32.totalorder %s458_s11, 2 }
  0x11   : > { %s103_s22 = sand.u32 1, %s446_s8   ;;  %s281_s24 = sshll.u32 %s454_s10, 3 }
  0x12   : > { %s268_s23 = sshll.u32 %s103_s22, 3  ;;  %s113_s27 = scalar_lea.hbm %s593_s0, %s281_s24 }
  0x13   : > { %s107_s28 = scalar_lea.vmem [#allocation2], %s268_s23  ;;  %s114_s30 = sshll.u32 %s113_s27, 4  ;;  %s115_s30 = int_to_ptr.hbm [resolvable:$true] %s114_s30 }
  0x14   : > { %s116_s29 = sshll.u32 %s107_s28, 4  ;;  %p287_p0 = pnand %p294_p13, %p513_p4  ;;  %s117_s29 = int_to_ptr.vmem [resolvable:$true] %s116_s29 }
  0x15   : > { %p271_p1 = scmp.ge.s32.totalorder %s458_s11, 1  ;;  %s104_s2 = scalar_lea.sflag [#allocation3], %s103_s22 }
  0x16   : > { %s460_s3 = smov 32   ;;  %s461_s4 = smov 2  }
  0x17   : > { %289 = dma.hbm_to_vmem [thread:$0]  (!%p287_p0), %s115_s30, 128, %s117_s29, %s104_s2, %s460_s3, %s460_s3, %s461_s4  }
  0x18   : > { %p124_p2 = scmp.lt.s32.totalorder %s458_s11, 3 }
  0x1a   : > { %p125_p3 = pnand %p271_p1, %p124_p2 }
  0x1b   : > { %s546_s5 = sand.u32 (!%p125_p3), 1, %s442_s7  }
  0x1c   : > { %128 = sbr.rel (%p125_p3) target bundleno = 49 (0x31), region = 24  ;;  %s272_s12 = sshll.u32 (!%p125_p3), %s546_s5, 3 }
  0x1d   : > { %s131_s13 = scalar_lea.sflag (!%p125_p3), [#allocation3], %s546_s5  ;;  %s134_s15 = scalar_lea.vmem (!%p125_p3), [#allocation2], %s272_s12 }
  0x21   : > { %429 = dma.done.wait (%p519_p8), %s131_s13, 128  }
  0x22   : > { %431 = vsyncadd (%p519_p8), %s131_s13, 4294967168  ;;  %s273_s16 = sshll.u32 %s546_s5, 1  ;;  %s278_s17 = sshll.u32 %s450_s9, 1  ;;  %v274_v0 = vld [vmem:[%s134_s15 + $0x2] sm:$0x3] }
  0x23   : > { %s178_s24 = scalar_lea.hbm %s594_s1, %s278_s17  ;;  %v275_v1 = vld [vmem:[%s134_s15 + $0x4] sm:$0x3]  ;;  %v276_v2 = vld [vmem:[%s134_s15 + $0x6] sm:$0x3]  ;;  %s153_s25 = scalar_lea.vmem [#allocation5], %s273_s16 }
  0x24   : > { %v159_v3 = vmul.f32 2.0, %v275_v1  ;;  %v163_v4 = vmul.f32 3.0, %v276_v2  ;;  %s180_s26 = sshll.u32 %s153_s25, 4  ;;  %s182_s27 = sshll.u32 %s178_s24, 4  ;;  %s181_s26 = int_to_ptr.vmem [resolvable:$true] %s180_s26  ;;  %s183_s27 = int_to_ptr.hbm [resolvable:$true] %s182_s27 }
  0x25   : > { %s167_s18 = scalar_lea.sflag [#allocation4], %s546_s5  ;;  %s390_s9 = sshra.s32 %s183_s27, 4  ;;  %s391_s9 = int_to_ptr.hbm [resolvable:$true] %s390_s9 }
  0x26   : > { %v160_v5 = vadd.f32 %v274_v0, %v159_v3  ;;  %s392_s28 = scalar_lea.hbm %s391_s9, 2  ;;  %s396_s2 = scalar_lea.hbm %s594_s1, 4 }
  0x27   : > { %p393_p4 = scmp.ne.s32.totalorder %s391_s9, %s392_s28  ;;  %p397_p7 = scmp.lt.s32.totalorder %s391_s9, %s594_s1 }
  0x28   : > { %v164_v6 = vadd.f32 %v163_v4, %v160_v5  ;;  %p398_p8 = scmp.lt.s32.totalorder %s396_s2, %s392_s28 }
  0x29   : > { %p394_p5 = pnand %p393_p4, %p523_p9 }
  0x2a   : > { %165 = vst [vmem:[%s153_s25] sm:$0x3] %v164_v6  ;;  %p399_p10 = por %p398_p8, %p397_p7 }
  0x2b   : > { %p395_p6 = pneg %p394_p5 }
  0x2d   : > { %p400_p13 = pnand %p399_p10, %p395_p6 }
  0x2f   : > { %403 = shalt.err (!%p400_p13)
}
  0x30   : > { %284 = dma.vmem_to_hbm [thread:$0]  (%p523_p9), %s181_s26, 32, %s183_s27, %s167_s18  }
  0x31 PF: > { %s194_s5 = sand.u32 1, %s438_s6   ;;  %p291_p0 = pnand %p267_p12, %p530_p11 }
  0x32   : > { %s195_s12 = scalar_lea.sflag [#allocation4], %s194_s5 }
  0x33   : > { %p292_p1 = pneg %p291_p0 }
  0x35   : > { %433 = dma.done.wait (%p292_p1), %s195_s12, 32  }
  0x36   : > { %435 = vsyncadd (%p292_p1), %s195_s12, 4294967264  ;;  %s17_s11 = sadd.s32 1, %s458_s11   ;;  %s599_s6 = smov %s442_s7 }
  0x37   : > { %p14_p2 = scmp.ge.s32.totalorder %s17_s11, 4   ;;  %s600_s7 = smov %s446_s8 }
  0x38   : > { %s601_s8 = smov %s528_s20  ;;  %s602_s9 = smov %s454_s10 }
  0x39   : > { %s603_s10 = smov %s605_s14  ;;  %16 = sbr.rel (!%p14_p2) target bundleno = 6 (0x6), region = 72 }
  0x3e   :  { %201 = vsyncpa [#allocation3], 1 }
  0x3f   :  { %203 = vsyncpa [#allocation3 + $0x1], 1 }
  0x40   :  { %204 = vsyncpa [#allocation4], 1 }
  0x41   :  { %206 = vsyncpa [#allocation4 + $0x1], 1 }

</bundles_post_ra>
